<compile_context>
chip_gen: v7x
topology: tpu7x:2x2x1
jax: 0.10.0
libtpu: 0.0.40
codegen_flags: <defaults>
</compile_context>

<pallas_src>
import jax
import jax.numpy as jnp
from jax.experimental import pallas as pl
from jax.experimental.pallas import tpu as pltpu


def phishhook_kernel(x_ref,
                     w1_ref, b1_ref,
                     w2_ref, b2_ref,
                     w3_ref, b3_ref,
                     w4_ref, b4_ref,
                     o_ref):
    # Layer 1: (TB, D) @ (D, 128), f32 accumulate; bias + ReLU in f32.
    h = jnp.dot(x_ref[...], w1_ref[...], preferred_element_type=jnp.float32)
    h = jnp.maximum(h + b1_ref[...], 0.0)
    # (dropout: identity in eval mode)

    # Layer 2: (TB, 128) @ (128, 256)
    h = jnp.dot(h.astype(w2_ref.dtype), w2_ref[...],
                preferred_element_type=jnp.float32)
    h = jnp.maximum(h + b2_ref[...], 0.0)
    # (dropout: identity in eval mode)

    # Layer 3: (TB, 256) @ (256, 64)
    h = jnp.dot(h.astype(w3_ref.dtype), w3_ref[...],
                preferred_element_type=jnp.float32)
    h = jnp.maximum(h + b3_ref[...], 0.0)

    # Output layer (64 -> 1): w4_ref is the row vector (1, 64) (reshaped in the wrapper).
    # Contract it with h (TB, 64) along the feature axis (NT contraction, same pattern as
    # q @ k^T). The result is natively (1, TB), i.e. lane-dense, so the store is unmasked
    # and no relayout is needed.
    w4 = w4_ref[...].astype(jnp.float32)                              # (1, 64)
    z = jax.lax.dot_general(w4, h, (((1,), (1,)), ((), ())),
                            preferred_element_type=jnp.float32)       # (1, TB)
    z = z + b4_ref[0]                                                 # scalar bias from SMEM
    o_ref[...] = jax.nn.sigmoid(z)[None].astype(o_ref.dtype)          # (1, 1, TB)


def _round_up(n, m):
    return pl.cdiv(n, m) * m


def phishhook_forward(x, params, *, batch_tile=512, operand_dtype=None):
    """x: (B, input_size) float32. params: dict of w1..w4 (in, out) and b1..b4 (1, out).

    operand_dtype: optionally jnp.bfloat16 to run the matmul operands in bf16
    (f32 accumulation / elementwise) -- recommended on v6e/v7x.
    """
    B, D = x.shape
    w1, w2, w3 = params["w1"], params["w2"], params["w3"]
    # Final-layer weight (64, 1) -> lane-major row (1, 64) for the NT contraction.
    w4 = params["w4"].reshape(1, -1)
    b1 = params["b1"].astype(jnp.float32)
    b2 = params["b2"].astype(jnp.float32)
    b3 = params["b3"].astype(jnp.float32)
    b4_smem = params["b4"].reshape(-1).astype(jnp.float32)   # (1,) scalar -> SMEM

    if operand_dtype is not None:
        x = x.astype(operand_dtype)
        w1, w2, w3, w4 = (w.astype(operand_dtype) for w in (w1, w2, w3, w4))

    # Batch tile: a multiple of 128 (fills MXU rows), capped so small batches don't
    # over-pad. Batch is zero-padded up to a multiple of the tile (sliced off below).
    bt = min(batch_tile, _round_up(B, 128))
    bt = _round_up(bt, 128)
    B_pad = _round_up(B, bt)
    if B_pad != B:
        x = jnp.pad(x, ((0, B_pad - B), (0, 0)))
    n_tiles = B_pad // bt

    def resident(arr):
        # Whole array, same block every grid step -> stays resident in VMEM.
        return pl.BlockSpec(arr.shape, lambda i: (0, 0))

    out = pl.pallas_call(
        phishhook_kernel,
        out_shape=jax.ShapeDtypeStruct((n_tiles, 1, bt), jnp.float32),
        grid_spec=pltpu.PrefetchScalarGridSpec(
            num_scalar_prefetch=0,
            grid=(n_tiles,),
            in_specs=[
                pl.BlockSpec((bt, D), lambda i: (i, 0)),             # x tile
                resident(w1), resident(b1),
                resident(w2), resident(b2),
                resident(w3), resident(b3),
                resident(w4),
                pl.BlockSpec(memory_space=pltpu.MemorySpace.SMEM),   # b4 scalar
            ],
            out_specs=pl.BlockSpec((1, 1, bt), lambda i: (i, 0, 0)),  # lane-dense row
        ),
        compiler_params=pltpu.CompilerParams(
            dimension_semantics=("parallel",),
        ),
    )(x, w1, b1, w2, b2, w3, b3, w4, b4_smem)

    return out.reshape(B_pad, 1)[:B]


def init_params(key, input_size):
    """Deterministic synthetic init (PyTorch-Linear-like uniform ranges)."""
    sizes = [(input_size, 128), (128, 256), (256, 64), (64, 1)]
    params = {}
    for idx, (fan_in, fan_out) in enumerate(sizes, start=1):
        key, kw, kb = jax.random.split(key, 3)
        bound = 1.0 / (fan_in ** 0.5)
        params[f"w{idx}"] = jax.random.uniform(
            kw, (fan_in, fan_out), jnp.float32, minval=-bound, maxval=bound)
        params[f"b{idx}"] = jax.random.uniform(
            kb, (1, fan_out), jnp.float32, minval=-bound, maxval=bound)
    return params


def reference_forward(x, params):
    hp = jax.lax.Precision.HIGHEST
    h = jnp.maximum(jnp.dot(x, params["w1"], precision=hp) + params["b1"], 0.0)
    h = jnp.maximum(jnp.dot(h, params["w2"], precision=hp) + params["b2"], 0.0)
    h = jnp.maximum(jnp.dot(h, params["w3"], precision=hp) + params["b3"], 0.0)
    return jax.nn.sigmoid(jnp.dot(h, params["w4"], precision=hp) + params["b4"])


if __name__ == "__main__":
    key = jax.random.PRNGKey(0)
    input_size = 32
    batch = 8

    kx, kp = jax.random.split(key)
    x = jax.random.normal(kx, (batch, input_size), jnp.float32)
    params = init_params(kp, input_size)

    ref = reference_forward(x, params)

    # f32 operands: tight match to the reference.
    out = jax.block_until_ready(phishhook_forward(x, params))
    assert out.shape == (batch, 1)
    assert jnp.allclose(out, ref, atol=1e-5, rtol=1e-5), "f32 mismatch vs reference"

    # bf16 operands (v6e/v7x MXU path) + ragged batch exercises padding/slicing.
    batch2 = 300
    x2 = jax.random.normal(jax.random.fold_in(key, 1), (batch2, input_size), jnp.float32)
    ref2 = reference_forward(x2, params)
    out2 = jax.block_until_ready(
        phishhook_forward(x2, params, operand_dtype=jnp.bfloat16))
    assert out2.shape == (batch2, 1)
    assert jnp.allclose(out2, ref2, atol=7e-2, rtol=7e-2), "bf16 mismatch vs reference"

    print("KERNEL_OK")
</pallas_src>

<mosaic_0001>
module attributes {stable_mosaic.version = 11 : i64} {
  func.func @phishhook_kernel(%arg0: i32, %arg1: memref<128x32xf32, #tpu.memory_space<vmem>>, %arg2: memref<32x128xf32, #tpu.memory_space<vmem>>, %arg3: memref<1x128xf32, #tpu.memory_space<vmem>>, %arg4: memref<128x256xf32, #tpu.memory_space<vmem>>, %arg5: memref<1x256xf32, #tpu.memory_space<vmem>>, %arg6: memref<256x64xf32, #tpu.memory_space<vmem>>, %arg7: memref<1x64xf32, #tpu.memory_space<vmem>>, %arg8: memref<1x64xf32, #tpu.memory_space<vmem>>, %arg9: memref<1xf32, #tpu.memory_space<smem>>, %arg10: memref<1x1x128xf32, #tpu.memory_space<vmem>>) attributes {dimension_semantics = [#tpu.dimension_semantics<parallel>], iteration_bounds = array<i64: 1>, scalar_prefetch = 0 : i64, scratch_operands = 0 : i64, tpu.core_type = #tpu.core_type<tc>, window_params = [{transform_indices = @transform_0, window_bounds = array<i64: 128, 32>}, {pipeline_mode = #tpu.pipeline_mode<synchronous>, transform_indices = @transform_1, window_bounds = array<i64: 32, 128>}, {pipeline_mode = #tpu.pipeline_mode<synchronous>, transform_indices = @transform_2, window_bounds = array<i64: 1, 128>}, {pipeline_mode = #tpu.pipeline_mode<synchronous>, transform_indices = @transform_3, window_bounds = array<i64: 128, 256>}, {pipeline_mode = #tpu.pipeline_mode<synchronous>, transform_indices = @transform_4, window_bounds = array<i64: 1, 256>}, {pipeline_mode = #tpu.pipeline_mode<synchronous>, transform_indices = @transform_5, window_bounds = array<i64: 256, 64>}, {pipeline_mode = #tpu.pipeline_mode<synchronous>, transform_indices = @transform_6, window_bounds = array<i64: 1, 64>}, {pipeline_mode = #tpu.pipeline_mode<synchronous>, transform_indices = @transform_7, window_bounds = array<i64: 1, 64>}, {transform_indices = @transform_8, window_bounds = array<i64: 1>}, {transform_indices = @transform_9, window_bounds = array<i64: 1, 1, 128>}]} {
    %c0 = arith.constant 0 : index
    %c0_0 = arith.constant 0 : index
    %0 = vector.load %arg1[%c0, %c0_0] : memref<128x32xf32, #tpu.memory_space<vmem>>, vector<128x32xf32>
    %c0_1 = arith.constant 0 : index
    %c0_2 = arith.constant 0 : index
    %1 = vector.load %arg2[%c0_1, %c0_2] : memref<32x128xf32, #tpu.memory_space<vmem>>, vector<32x128xf32>
    %cst = arith.constant dense<0.000000e+00> : vector<128x128xf32>
    %2 = tpu.matmul %0, %1, %cst {dimension_numbers = #tpu.dot_dimension_numbers<[1], [0], [0], [1], [0, 0, 1, 1], [], []>} : vector<128x32xf32>, vector<32x128xf32>, vector<128x128xf32> -> vector<128x128xf32>
    %c0_3 = arith.constant 0 : index
    %c0_4 = arith.constant 0 : index
    %3 = vector.load %arg3[%c0_3, %c0_4] : memref<1x128xf32, #tpu.memory_space<vmem>>, vector<1x128xf32>
    %4 = vector.broadcast %3 : vector<1x128xf32> to vector<128x128xf32>
    %5 = arith.addf %2, %4 : vector<128x128xf32>
    %cst_5 = arith.constant 0.000000e+00 : f32
    %6 = vector.broadcast %cst_5 : f32 to vector<128x128xf32>
    %7 = arith.maximumf %5, %6 : vector<128x128xf32>
    %c0_6 = arith.constant 0 : index
    %c0_7 = arith.constant 0 : index
    %8 = vector.load %arg4[%c0_6, %c0_7] : memref<128x256xf32, #tpu.memory_space<vmem>>, vector<128x256xf32>
    %cst_8 = arith.constant dense<0.000000e+00> : vector<128x256xf32>
    %9 = tpu.matmul %7, %8, %cst_8 {dimension_numbers = #tpu.dot_dimension_numbers<[1], [0], [0], [1], [0, 0, 1, 1], [], []>} : vector<128x128xf32>, vector<128x256xf32>, vector<128x256xf32> -> vector<128x256xf32>
    %c0_9 = arith.constant 0 : index
    %c0_10 = arith.constant 0 : index
    %10 = vector.load %arg5[%c0_9, %c0_10] : memref<1x256xf32, #tpu.memory_space<vmem>>, vector<1x256xf32>
    %11 = vector.broadcast %10 : vector<1x256xf32> to vector<128x256xf32>
    %12 = arith.addf %9, %11 : vector<128x256xf32>
    %cst_11 = arith.constant 0.000000e+00 : f32
    %13 = vector.broadcast %cst_11 : f32 to vector<128x256xf32>
    %14 = arith.maximumf %12, %13 : vector<128x256xf32>
    %c0_12 = arith.constant 0 : index
    %c0_13 = arith.constant 0 : index
    %15 = vector.load %arg6[%c0_12, %c0_13] : memref<256x64xf32, #tpu.memory_space<vmem>>, vector<256x64xf32>
    %cst_14 = arith.constant dense<0.000000e+00> : vector<128x64xf32>
    %16 = tpu.matmul %14, %15, %cst_14 {dimension_numbers = #tpu.dot_dimension_numbers<[1], [0], [0], [1], [0, 0, 1, 1], [], []>} : vector<128x256xf32>, vector<256x64xf32>, vector<128x64xf32> -> vector<128x64xf32>
    %c0_15 = arith.constant 0 : index
    %c0_16 = arith.constant 0 : index
    %17 = vector.load %arg7[%c0_15, %c0_16] : memref<1x64xf32, #tpu.memory_space<vmem>>, vector<1x64xf32>
    %18 = vector.broadcast %17 : vector<1x64xf32> to vector<128x64xf32>
    %19 = arith.addf %16, %18 : vector<128x64xf32>
    %cst_17 = arith.constant 0.000000e+00 : f32
    %20 = vector.broadcast %cst_17 : f32 to vector<128x64xf32>
    %21 = arith.maximumf %19, %20 : vector<128x64xf32>
    %c0_18 = arith.constant 0 : index
    %c0_19 = arith.constant 0 : index
    %22 = vector.load %arg8[%c0_18, %c0_19] : memref<1x64xf32, #tpu.memory_space<vmem>>, vector<1x64xf32>
    %cst_20 = arith.constant dense<0.000000e+00> : vector<1x128xf32>
    %23 = tpu.matmul %22, %21, %cst_20 {dimension_numbers = #tpu.dot_dimension_numbers<[1], [1], [0], [0], [0, 0, 1, 0], [], []>} : vector<1x64xf32>, vector<128x64xf32>, vector<1x128xf32> -> vector<1x128xf32>
    %c0_21 = arith.constant 0 : index
    %24 = memref.load %arg9[%c0_21] : memref<1xf32, #tpu.memory_space<smem>>
    %25 = vector.broadcast %24 : f32 to vector<1x128xf32>
    %26 = arith.addf %23, %25 : vector<1x128xf32>
    %27 = arith.negf %26 : vector<1x128xf32>
    %28 = math.exp %27 : vector<1x128xf32>
    %cst_22 = arith.constant 1.000000e+00 : f32
    %29 = vector.broadcast %cst_22 : f32 to vector<1x128xf32>
    %30 = arith.addf %29, %28 : vector<1x128xf32>
    %31 = arith.divf %29, %30 : vector<1x128xf32>
    %32 = vector.shape_cast %31 : vector<1x128xf32> to vector<1x1x128xf32>
    %c0_23 = arith.constant 0 : index
    %c0_24 = arith.constant 0 : index
    %c0_25 = arith.constant 0 : index
    %33 = vector.load %arg10[%c0_23, %c0_24, %c0_25] : memref<1x1x128xf32, #tpu.memory_space<vmem>>, vector<1x1x128xf32>
    tpu.vector_store %arg10[%c0_23, %c0_24, %c0_25], %32 {strides = array<i32>} : memref<1x1x128xf32, #tpu.memory_space<vmem>>, vector<1x1x128xf32>,
    return
  }
  func.func @transform_0(%arg0: i32) -> (i32, i32) {
    %c0_i32 = arith.constant 0 : i32
    %c0_i32_0 = arith.constant 0 : i32
    return %arg0, %c0_i32 : i32, i32
  }
  func.func @transform_1(%arg0: i32) -> (i32, i32) {
    %c0_i32 = arith.constant 0 : i32
    %c0_i32_0 = arith.constant 0 : i32
    %c0_i32_1 = arith.constant 0 : i32
    return %c0_i32, %c0_i32_0 : i32, i32
  }
  func.func @transform_2(%arg0: i32) -> (i32, i32) {
    %c0_i32 = arith.constant 0 : i32
    %c0_i32_0 = arith.constant 0 : i32
    %c0_i32_1 = arith.constant 0 : i32
    return %c0_i32, %c0_i32_0 : i32, i32
  }
  func.func @transform_3(%arg0: i32) -> (i32, i32) {
    %c0_i32 = arith.constant 0 : i32
    %c0_i32_0 = arith.constant 0 : i32
    %c0_i32_1 = arith.constant 0 : i32
    return %c0_i32, %c0_i32_0 : i32, i32
  }
  func.func @transform_4(%arg0: i32) -> (i32, i32) {
    %c0_i32 = arith.constant 0 : i32
    %c0_i32_0 = arith.constant 0 : i32
    %c0_i32_1 = arith.constant 0 : i32
    return %c0_i32, %c0_i32_0 : i32, i32
  }
  func.func @transform_5(%arg0: i32) -> (i32, i32) {
    %c0_i32 = arith.constant 0 : i32
    %c0_i32_0 = arith.constant 0 : i32
    %c0_i32_1 = arith.constant 0 : i32
    return %c0_i32, %c0_i32_0 : i32, i32
  }
  func.func @transform_6(%arg0: i32) -> (i32, i32) {
    %c0_i32 = arith.constant 0 : i32
    %c0_i32_0 = arith.constant 0 : i32
    %c0_i32_1 = arith.constant 0 : i32
    return %c0_i32, %c0_i32_0 : i32, i32
  }
  func.func @transform_7(%arg0: i32) -> (i32, i32) {
    %c0_i32 = arith.constant 0 : i32
    %c0_i32_0 = arith.constant 0 : i32
    %c0_i32_1 = arith.constant 0 : i32
    return %c0_i32, %c0_i32_0 : i32, i32
  }
  func.func @transform_8(%arg0: i32) -> i32 {
    %c0_i32 = arith.constant 0 : i32
    %c0_i32_0 = arith.constant 0 : i32
    return %c0_i32 : i32
  }
  func.func @transform_9(%arg0: i32) -> (i32, i32, i32) {
    %c0_i32 = arith.constant 0 : i32
    %c0_i32_0 = arith.constant 0 : i32
    %c0_i32_1 = arith.constant 0 : i32
    return %arg0, %c0_i32, %c0_i32_0 : i32, i32, i32
  }
}

</mosaic_0001>

<bundles_post_ra>
// kernel: tpu_custom_call.1
= control target key start
LH: loop header
LB: loop body
LE: loop exit
PB: predicated region body
PF: predicated region fallthrough
CT: control target
= control target key end

     0   :  { %vm61_vm0 = vcmask 261120   ;;  %s1679_s0 = inlined_call_operand.vmem [shape: f32[128,32], index: 0, kind: input, shape index: {}]   ;;  %s1680_s1 = inlined_call_operand.vmem [shape: f32[32,128], index: 1, kind: input, shape index: {}]   ;;  %s1681_s2 = inlined_call_operand.vmem [shape: f32[1,128], index: 2, kind: input, shape index: {}]   ;;  %s1682_s3 = inlined_call_operand.vmem [shape: f32[128,256], index: 3, kind: input, shape index: {}]   ;;  %s1683_s4 = inlined_call_operand.vmem [shape: f32[1,256], index: 4, kind: input, shape index: {}]   ;;  %s1684_s5 = inlined_call_operand.vmem [shape: f32[256,64], index: 5, kind: input, shape index: {}]   ;;  %s1685_s6 = inlined_call_operand.vmem [shape: f32[1,64], index: 6, kind: input, shape index: {}]   ;;  %s1686_s7 = inlined_call_operand.vmem [shape: f32[1,64], index: 7, kind: input, shape index: {}]   ;;  %s1687_s8 = inlined_call_operand.<no memory space> [shape: f32[1], index: 8, kind: input, shape index: {}]   ;;  %s1688_s9 = inlined_call_operand.hbm [shape: f32[1,1,128], index: 9, kind: output, shape index: {}]  }
   0x1   :  { %v50_v0 = vld [vmem:[%s1680_s1] sm:$0xff]  ;;  %v51_v1 = vld [vmem:[%s1680_s1 + $0x8] sm:$0xff]  ;;  %v52_v2 = vld [vmem:[%s1680_s1 + $0x10] sm:$0xff] }
   0x2   :  { %v1074_v3 = vpack.c.bf16 %v51_v1, %v50_v0  ;;  %v53_v4 = vld [vmem:[%s1680_s1 + $0x18] sm:$0xff]  ;;  %v34_v5 = vld [vmem:[%s1679_s0] sm:$0xff]  ;;  %v35_v7 = vld [vmem:[%s1679_s0 + $0x8] sm:$0xff] }
   0x3   :  { %v1078_v6 = vpack.c.bf16 %v53_v4, %v52_v2  ;;  %1015 = vmatprep.mubr.msk.f32.mxu0 %vm61_vm0, %v34_v5  ;;  %v272_v8 = vld [vmem:[%s1682_s3 + $0x8] sm:$0xff]  ;;  %v36_v9 = vld [vmem:[%s1679_s0 + $0x10] sm:$0xff]  ;;  %v274_v10 = vld [vmem:[%s1682_s3 + $0x18] sm:$0xff] }
   0x4   :  { %1075 = vmatprep.subr.bf16.mxu0 %v1074_v3  ;;  %v271_v11 = vld [vmem:[%s1682_s3] sm:$0xff]  ;;  %v273_v12 = vld [vmem:[%s1682_s3 + $0x10] sm:$0xff]  ;;  %v1082_v13 = vpack.c.bf16 %v274_v10, %v272_v8  ;;  %v276_v15 = vld [vmem:[%s1682_s3 + $0x28] sm:$0xff] }
   0x5   :  { %1077 = vmatpush3.bf16.msra.mxu0 %v1074_v3  ;;  %v1084_v14 = vpack.c.bf16 %v273_v12, %v271_v11  ;;  %v278_v16 = vld [vmem:[%s1682_s3 + $0x38] sm:$0xff]  ;;  %v275_v17 = vld [vmem:[%s1682_s3 + $0x20] sm:$0xff]  ;;  %v277_v19 = vld [vmem:[%s1682_s3 + $0x30] sm:$0xff] }
   0x6   :  { %1079 = vmatprep.subr.bf16.mxu0 %v1078_v6  ;;  %v1086_v18 = vpack.c.bf16 %v278_v16, %v276_v15  ;;  %v280_v20 = vld [vmem:[%s1682_s3 + $0x48] sm:$0xff]  ;;  %v282_v21 = vld [vmem:[%s1682_s3 + $0x58] sm:$0xff]  ;;  %1083 = vmatprep.subr.bf16.mxu1 %v1082_v13  ;;  %v1088_v22 = vpack.c.bf16 %v277_v19, %v275_v17  ;;  %v279_v25 = vld [vmem:[%s1682_s3 + $0x40] sm:$0xff] }
   0x7   :  { %1085 = vmatpush1.bf16.msra.mxu1 %v1084_v14  ;;  %v37_v23 = vld [vmem:[%s1679_s0 + $0x18] sm:$0xff]  ;;  %v1090_v24 = vpack.c.bf16 %v282_v21, %v280_v20  ;;  %v281_v26 = vld [vmem:[%s1682_s3 + $0x50] sm:$0xff]  ;;  %v38_v27 = vld [vmem:[%s1679_s0 + $0x20] sm:$0xff] }
   0x8   :  { %1087 = vmatprep.subr.bf16.mxu1 %v1086_v18  ;;  %v284_v28 = vld [vmem:[%s1682_s3 + $0x68] sm:$0xff]  ;;  %v286_v29 = vld [vmem:[%s1682_s3 + $0x78] sm:$0xff]  ;;  %v1092_v31 = vpack.c.bf16 %v281_v26, %v279_v25  ;;  %v283_v33 = vld [vmem:[%s1682_s3 + $0x60] sm:$0xff] }
   0x9   :  { %1081 = vmatpush3.bf16.msra.mxu0 %v1078_v6  ;;  %v39_v30 = vld [vmem:[%s1679_s0 + $0x28] sm:$0xff]  ;;  %v1094_v32 = vpack.c.bf16 %v286_v29, %v284_v28  ;;  %v285_v34 = vld [vmem:[%s1682_s3 + $0x70] sm:$0xff] }
   0xb   :  { %1089 = vmatpush1.bf16.msra.mxu1 %v1088_v22 }
   0xc   :  { %1016 = vmatmul.mubr.msk.f32.vlgmr.msra.gmra.mrb[0].mxu0 %vm61_vm0, %v35_v7  ;;  %1091 = vmatprep.subr.bf16.mxu1 %v1090_v24 }
   0xd   :  { %1018 = vmatprep.mubr.msk.f32.mxu0 %vm61_vm0, %v36_v9 }
  0x10   :  { %1019 = vmatmul.mubr.msk.f32.gmra.mrb[2].mxu0 %vm61_vm0, %v37_v23 }
  0x11   :  { %1021 = vmatprep.mubr.msk.f32.mxu0 %vm61_vm0, %v38_v27 }
  0x12   :  { %15 = vsyncpa [#allocation4], 0  ;;  %v40_v35 = vld [vmem:[%s1679_s0 + $0x30] sm:$0xff]  ;;  %v288_v36 = vld [vmem:[%s1682_s3 + $0x88] sm:$0xff]  ;;  %1093 = vmatpush1.bf16.msra.mxu1 %v1092_v31  ;;  %v1096_v38 = vpack.c.bf16 %v285_v34, %v283_v33  ;;  %v1210_v6 = vmov 0.0   ;;  %vm1212_vm1 = vmmov 0  }
  0x13   :  { %v290_v37 = vld [vmem:[%s1682_s3 + $0x98] sm:$0xff]  ;;  %1095 = vmatprep.subr.bf16.mxu1 %v1094_v32  ;;  %v287_v41 = vld [vmem:[%s1682_s3 + $0x80] sm:$0xff]  ;;  %v289_v42 = vld [vmem:[%s1682_s3 + $0x90] sm:$0xff]  ;;  %379 = vmatprep.mubr.f32.mxu1 %v1210_v6  ;;  %vm711_vm2 = vcmask 523264   ;;  %s1213_s23 = smov [#allocation3]  }
  0x14   :  { %1022 = vmatmul.mubr.msk.f32.gmra.mrb[4].mxu0 %vm61_vm0, %v39_v30  ;;  %v41_v39 = vld [vmem:[%s1679_s0 + $0x38] sm:$0xff]  ;;  %v1098_v40 = vpack.c.bf16 %v290_v37, %v288_v36  ;;  %v42_v43 = vld [vmem:[%s1679_s0 + $0x40] sm:$0xff]  ;;  %v292_v44 = vld [vmem:[%s1682_s3 + $0xa8] sm:$0xff]  ;;  %v1100_v46 = vpack.c.bf16 %v289_v42, %v287_v41  ;;  %s846_s1 = sshll.u32 %s1213_s23, 4  ;;  %s847_s1 = int_to_ptr.vmem [resolvable:$true] %s846_s1 }
  0x15   :  { %1024 = vmatprep.mubr.msk.f32.mxu0 %vm61_vm0, %v40_v35  ;;  %v294_v45 = vld [vmem:[%s1682_s3 + $0xb8] sm:$0xff]  ;;  %v43_v47 = vld [vmem:[%s1679_s0 + $0x48] sm:$0xff]  ;;  %v291_v49 = vld [vmem:[%s1682_s3 + $0xa0] sm:$0xff]  ;;  %p1191_p1 = scmp.lt.s32.totalorder %s847_s1, %s847_s1 }
  0x16   :  { %1097 = vmatpush1.bf16.msra.mxu1 %v1096_v38  ;;  %v1102_v48 = vpack.c.bf16 %v294_v45, %v292_v44  ;;  %v293_v50 = vld [vmem:[%s1682_s3 + $0xb0] sm:$0xff]  ;;  %v296_v52 = vld [vmem:[%s1682_s3 + $0xc8] sm:$0xff]  ;;  %v298_v53 = vld [vmem:[%s1682_s3 + $0xd8] sm:$0xff] }
  0x17   :  { %1099 = vmatprep.subr.bf16.mxu1 %v1098_v40  ;;  %v44_v51 = vld [vmem:[%s1679_s0 + $0x50] sm:$0xff]  ;;  %v1104_v54 = vpack.c.bf16 %v293_v50, %v291_v49  ;;  %v45_v55 = vld [vmem:[%s1679_s0 + $0x58] sm:$0xff]  ;;  %v1106_v56 = vpack.c.bf16 %v298_v53, %v296_v52  ;;  %v295_v57 = vld [vmem:[%s1682_s3 + $0xc0] sm:$0xff] }
  0x18   :  { %1025 = vmatmul.mubr.msk.f32.gmra.mrb[6].mxu0 %vm61_vm0, %v41_v39  ;;  %v297_v58 = vld [vmem:[%s1682_s3 + $0xd0] sm:$0xff]  ;;  %v46_v59 = vld [vmem:[%s1679_s0 + $0x60] sm:$0xff]  ;;  %v47_v61 = vld [vmem:[%s1679_s0 + $0x68] sm:$0xff] }
  0x19   :  { %1027 = vmatprep.mubr.msk.f32.mxu0 %vm61_vm0, %v42_v43  ;;  %v1108_v60 = vpack.c.bf16 %v297_v58, %v295_v57  ;;  %v48_v62 = vld [vmem:[%s1679_s0 + $0x70] sm:$0xff]  ;;  %v49_v63 = vld [vmem:[%s1679_s0 + $0x78] sm:$0xff]  ;;  %v300_v0 = vld [vmem:[%s1682_s3 + $0xe8] sm:$0xff]  ;;  %s1190_s0 = scalar_lea.vmem %s847_s1, 32 }
  0x1a   :  { %1101 = vmatpush1.bf16.msra.mxu1 %v1100_v46  ;;  %v302_v1 = vld [vmem:[%s1682_s3 + $0xf8] sm:$0xff]  ;;  %v299_v3 = vld [vmem:[%s1682_s3 + $0xe0] sm:$0xff]  ;;  %v301_v4 = vld [vmem:[%s1682_s3 + $0xf0] sm:$0xff] }
  0x1b   :  { %1103 = vmatprep.subr.bf16.mxu1 %v1102_v48  ;;  %v1110_v2 = vpack.c.bf16 %v302_v1, %v300_v0  ;;  %v1112_v5 = vpack.c.bf16 %v301_v4, %v299_v3  ;;  %v524_v7 = vld [vmem:[%s1684_s5 + $0x80] sm:$0xff]  ;;  %v525_v8 = vld [vmem:[%s1684_s5 + $0x88] sm:$0xff]  ;;  %v526_v12 = vld [vmem:[%s1684_s5 + $0x90] sm:$0xff] }
  0x1c   :  { %1028 = vmatmul.mubr.msk.f32.gmra.mrb[8].mxu0 %vm61_vm0, %v43_v47  ;;  %v508_v9 = vld [vmem:[%s1684_s5] sm:$0xff]  ;;  %v1114_v10 = vpack.c.bf16 %v525_v8, %v524_v7  ;;  %v509_v11 = vld [vmem:[%s1684_s5 + $0x8] sm:$0xff]  ;;  %v527_v13 = vld [vmem:[%s1684_s5 + $0x98] sm:$0xff] }
  0x1d   :  { %1030 = vmatprep.mubr.msk.f32.mxu0 %vm61_vm0, %v44_v51  ;;  %v1116_v14 = vpack.c.bf16 %v509_v11, %v508_v9  ;;  %v1118_v15 = vpack.c.bf16 %v527_v13, %v526_v12  ;;  %v510_v16 = vld [vmem:[%s1684_s5 + $0x10] sm:$0xff]  ;;  %v511_v17 = vld [vmem:[%s1684_s5 + $0x18] sm:$0xff]  ;;  %v528_v18 = vld [vmem:[%s1684_s5 + $0xa0] sm:$0xff] }
  0x1e   :  { %1105 = vmatpush1.bf16.msra.mxu1 %v1104_v54  ;;  %1115 = vmatprep.subr.bf16.mxu0 %v1114_v10  ;;  %v529_v19 = vld [vmem:[%s1684_s5 + $0xa8] sm:$0xff]  ;;  %v1120_v20 = vpack.c.bf16 %v511_v17, %v510_v16  ;;  %v512_v22 = vld [vmem:[%s1684_s5 + $0x20] sm:$0xff]  ;;  %v530_v24 = vld [vmem:[%s1684_s5 + $0xb0] sm:$0xff] }
  0x1f   :  { %1107 = vmatprep.subr.bf16.mxu1 %v1106_v56  ;;  %1117 = vmatpush3.bf16.msra.mxu0 %v1116_v14  ;;  %v1122_v21 = vpack.c.bf16 %v529_v19, %v528_v18  ;;  %v513_v23 = vld [vmem:[%s1684_s5 + $0x28] sm:$0xff]  ;;  %v531_v25 = vld [vmem:[%s1684_s5 + $0xb8] sm:$0xff]  ;;  %v514_v28 = vld [vmem:[%s1684_s5 + $0x30] sm:$0xff] }
  0x20   :  { %1031 = vmatmul.mubr.msk.f32.gmra.mrb[10].mxu0 %vm61_vm0, %v45_v55  ;;  %1119 = vmatprep.subr.bf16.mxu0 %v1118_v15  ;;  %v1124_v26 = vpack.c.bf16 %v513_v23, %v512_v22  ;;  %v1126_v27 = vpack.c.bf16 %v531_v25, %v530_v24  ;;  %v515_v29 = vld [vmem:[%s1684_s5 + $0x38] sm:$0xff]  ;;  %v532_v30 = vld [vmem:[%s1684_s5 + $0xc0] sm:$0xff]  ;;  %v533_v31 = vld [vmem:[%s1684_s5 + $0xc8] sm:$0xff] }
  0x21   :  { %1033 = vmatprep.mubr.msk.f32.mxu0 %vm61_vm0, %v46_v59  ;;  %v1128_v32 = vpack.c.bf16 %v515_v29, %v514_v28  ;;  %v1130_v33 = vpack.c.bf16 %v533_v31, %v532_v30  ;;  %v516_v34 = vld [vmem:[%s1684_s5 + $0x40] sm:$0xff]  ;;  %v517_v35 = vld [vmem:[%s1684_s5 + $0x48] sm:$0xff]  ;;  %v534_v36 = vld [vmem:[%s1684_s5 + $0xd0] sm:$0xff] }
  0x22   :  { %1109 = vmatpush1.bf16.msra.mxu1 %v1108_v60  ;;  %v535_v37 = vld [vmem:[%s1684_s5 + $0xd8] sm:$0xff]  ;;  %v1132_v38 = vpack.c.bf16 %v517_v35, %v516_v34  ;;  %v518_v40 = vld [vmem:[%s1684_s5 + $0x50] sm:$0xff]  ;;  %v536_v42 = vld [vmem:[%s1684_s5 + $0xe0] sm:$0xff] }
  0x23   :  { %1111 = vmatprep.subr.bf16.mxu1 %v1110_v2  ;;  %1121 = vmatpush3.bf16.msra.mxu0 %v1120_v20  ;;  %v1134_v39 = vpack.c.bf16 %v535_v37, %v534_v36  ;;  %v519_v41 = vld [vmem:[%s1684_s5 + $0x58] sm:$0xff]  ;;  %v537_v43 = vld [vmem:[%s1684_s5 + $0xe8] sm:$0xff]  ;;  %v1518_v46 = vld [vmem:[%s1681_s2] ss:$0 sm:$0xff] }
  0x24   :  { %1034 = vmatmul.mubr.msk.f32.gmra.mrb[12].mxu0 %vm61_vm0, %v47_v61  ;;  %1123 = vmatprep.subr.bf16.mxu0 %v1122_v21  ;;  %v1136_v44 = vpack.c.bf16 %v519_v41, %v518_v40  ;;  %v1138_v45 = vpack.c.bf16 %v537_v43, %v536_v42  ;;  %v538_v35 = vld [vmem:[%s1684_s5 + $0xf0] sm:$0xff]  ;;  %v539_v36 = vld [vmem:[%s1684_s5 + $0xf8] sm:$0xff]  ;;  %v305_v41 = vlaneseq  ;;  %vm1619_vm3 = vmpackc.low %vm711_vm2, %vm711_vm2 }
  0x25   :  { %1036 = vmatprep.mubr.msk.f32.mxu0 %vm61_vm0, %v48_v62  ;;  %v1142_v37 = vpack.c.bf16 %v539_v36, %v538_v35 }
  0x26   :  { %1113 = vmatpush1.bf16.msra.mxu1 %v1112_v5  ;;  %v306_v42 = vshrl.u32 %v305_v41, 7 }
  0x27   :  { %1125 = vmatpush3.bf16.msra.mxu0 %v1124_v26 }
  0x28   :  { %1037 = vmatmul.mubr.msk.f32.gmra.mrb[14].mxu0 %vm61_vm0, %v49_v63  ;;  %1127 = vmatprep.subr.bf16.mxu0 %v1126_v27  ;;  %v307_v43 = vsub.s32 0, %v306_v42 }
  0x2b   :  { %1129 = vmatpush3.bf16.msra.mxu0 %v1128_v32  ;;  %v520_v32 = vld [vmem:[%s1684_s5 + $0x60] sm:$0xff] }
  0x2c   :  { %1131 = vmatprep.subr.bf16.mxu0 %v1130_v33  ;;  %v521_v33 = vld [vmem:[%s1684_s5 + $0x68] sm:$0xff] }
  0x2d   :  { %v1140_v34 = vpack.c.bf16 %v521_v33, %v520_v32 }
  0x2f   :  { %1133 = vmatpush3.bf16.msra.mxu0 %v1132_v38  ;;  %v522_v38 = vld [vmem:[%s1684_s5 + $0x70] sm:$0xff] }
  0x30   :  { %1135 = vmatprep.subr.bf16.mxu0 %v1134_v39  ;;  %v523_v39 = vld [vmem:[%s1684_s5 + $0x78] sm:$0xff] }
  0x31   :  { %v1144_v40 = vpack.c.bf16 %v523_v39, %v522_v38 }
  0x33   :  { %1137 = vmatpush3.bf16.msra.mxu0 %v1136_v44  ;;  %v303_v44 = vld [vmem:[%s1683_s4] sm:$0x3] }
  0x34   :  { %1139 = vmatprep.subr.bf16.mxu0 %v1138_v45  ;;  %v311_v45 = vsub.s32 1, %v306_v42 }
  0x37   :  { %1141 = vmatpush3.bf16.msra.mxu0 %v1140_v34 }
  0x38   :  { %1143 = vmatprep.subr.bf16.mxu0 %v1142_v37 }
  0x3b   :  { %1145 = vmatpush3.bf16.msra.mxu0 %v1144_v40 }
  0xdf   :  { %v1017_v47 = vpop.f32.mrb[0].mxu0 }
  0xe0   :  { %v176_v48 = vpop.f32.mrb[1].mxu0  ;;  %v182_v50 = vadd.f32 %v1017_v47, %v1518_v46  ;;  %v1574_v47 = vrot.slane %v303_v44, %v311_v45 }
  0xe1   :  { %v177_v49 = vadd.f32 %v1518_v46, %v176_v48 }
  0xe2   :  { %v256_v55 = vmax.f32 %v182_v50, 0.0 }
  0xe3   :  { %v255_v51 = vmax.f32 %v177_v49, 0.0  ;;  %v1020_v52 = vpop.f32.mrb[2].mxu0 }
  0xe4   :  { %v186_v53 = vpop.f32.mrb[3].mxu0  ;;  %v192_v59 = vadd.f32 %v1020_v52, %v1518_v46 }
  0xe5   :  { %380 = vmatmul.mubr.f32.vlgmr.msra.gmra.mrb[0].mxu1 %v255_v51  ;;  %v187_v54 = vadd.f32 %v1518_v46, %v186_v53 }
  0xe6   :  { %385 = vmatprep.mubr.f32.mxu1 %v1210_v6  ;;  %v258_v63 = vmax.f32 %v192_v59, 0.0 }
  0xe7   :  { %v1023_v56 = vpop.f32.mrb[4].mxu0  ;;  %v257_v58 = vmax.f32 %v187_v54, 0.0 }
  0xe8   :  { %v196_v57 = vpop.f32.mrb[5].mxu0  ;;  %v202_v3 = vadd.f32 %v1023_v56, %v1518_v46 }
  0xe9   :  { %386 = vmatmul.mubr.f32.gmra.mrb[2].mxu1 %v256_v55  ;;  %v197_v62 = vadd.f32 %v1518_v46, %v196_v57 }
  0xea   :  { %391 = vmatprep.mubr.f32.mxu1 %v1210_v6  ;;  %v260_v8 = vmax.f32 %v202_v3, 0.0 }
  0xeb   :  { %v1026_v60 = vpop.f32.mrb[6].mxu0  ;;  %v259_v2 = vmax.f32 %v197_v62, 0.0 }
  0xec   :  { %v206_v61 = vpop.f32.mrb[7].mxu0  ;;  %v212_v12 = vadd.f32 %v1026_v60, %v1518_v46 }
  0xed   :  { %392 = vmatmul.mubr.f32.gmra.mrb[4].mxu1 %v257_v58  ;;  %v207_v7 = vadd.f32 %v1518_v46, %v206_v61 }
  0xee   :  { %397 = vmatprep.mubr.f32.mxu1 %v1210_v6  ;;  %v262_v16 = vmax.f32 %v212_v12, 0.0 }
  0xef   :  { %v1029_v0 = vpop.f32.mrb[8].mxu0  ;;  %v261_v11 = vmax.f32 %v207_v7, 0.0 }
  0xf0   :  { %v216_v1 = vpop.f32.mrb[9].mxu0  ;;  %v222_v18 = vadd.f32 %v1029_v0, %v1518_v46 }
  0xf1   :  { %398 = vmatmul.mubr.f32.gmra.mrb[6].mxu1 %v258_v63  ;;  %v217_v15 = vadd.f32 %v1518_v46, %v216_v1 }
  0xf2   :  { %403 = vmatprep.mubr.f32.mxu1 %v1210_v6  ;;  %v264_v20 = vmax.f32 %v222_v18, 0.0 }
  0xf3   :  { %v1032_v4 = vpop.f32.mrb[10].mxu0  ;;  %v263_v17 = vmax.f32 %v217_v15, 0.0 }
  0xf4   :  { %v226_v5 = vpop.f32.mrb[11].mxu0  ;;  %v232_v22 = vadd.f32 %v1032_v4, %v1518_v46 }
  0xf5   :  { %404 = vmatmul.mubr.f32.gmra.mrb[8].mxu1 %v259_v2  ;;  %v227_v19 = vadd.f32 %v1518_v46, %v226_v5 }
  0xf6   :  { %409 = vmatprep.mubr.f32.mxu1 %v1210_v6  ;;  %v266_v24 = vmax.f32 %v232_v22, 0.0 }
  0xf7   :  { %v1035_v9 = vpop.f32.mrb[12].mxu0  ;;  %v265_v21 = vmax.f32 %v227_v19, 0.0 }
  0xf8   :  { %v236_v10 = vpop.f32.mrb[13].mxu0  ;;  %v242_v26 = vadd.f32 %v1035_v9, %v1518_v46 }
  0xf9   :  { %410 = vmatmul.mubr.f32.gmra.mrb[10].mxu1 %v260_v8  ;;  %v237_v23 = vadd.f32 %v1518_v46, %v236_v10 }
  0xfa   :  { %415 = vmatprep.mubr.f32.mxu1 %v1210_v6  ;;  %v268_v28 = vmax.f32 %v242_v26, 0.0 }
  0xfb   :  { %v1038_v13 = vpop.f32.mrb[14].mxu0  ;;  %v267_v25 = vmax.f32 %v237_v23, 0.0 }
  0xfc   :  { %v246_v14 = vpop.f32.mrb[15].mxu0  ;;  %v252_v30 = vadd.f32 %v1038_v13, %v1518_v46 }
  0xfd   :  { %416 = vmatmul.mubr.f32.gmra.mrb[12].mxu1 %v261_v11  ;;  %v247_v27 = vadd.f32 %v1518_v46, %v246_v14  ;;  %v1572_v46 = vrot.slane %v303_v44, %v307_v43 }
  0xfe   :  { %421 = vmatprep.mubr.f32.mxu1 %v1210_v6  ;;  %v270_v31 = vmax.f32 %v252_v30, 0.0 }
  0xff   :  { %v269_v29 = vmax.f32 %v247_v27, 0.0 }
 0x101   :  { %422 = vmatmul.mubr.f32.gmra.mrb[14].mxu1 %v262_v16 }
 0x102   :  { %427 = vmatprep.mubr.f32.mxu1 %v1210_v6 }
 0x105   :  { %428 = vmatmul.mubr.f32.gmra.mrb[16].mxu1 %v263_v17 }
 0x106   :  { %433 = vmatprep.mubr.f32.mxu1 %v1210_v6 }
 0x109   :  { %434 = vmatmul.mubr.f32.gmra.mrb[18].mxu1 %v264_v20 }
 0x10a   :  { %439 = vmatprep.mubr.f32.mxu1 %v1210_v6 }
 0x10d   :  { %440 = vmatmul.mubr.f32.gmra.mrb[20].mxu1 %v265_v21 }
 0x10e   :  { %445 = vmatprep.mubr.f32.mxu1 %v1210_v6 }
 0x111   :  { %446 = vmatmul.mubr.f32.gmra.mrb[22].mxu1 %v266_v24 }
 0x112   :  { %451 = vmatprep.mubr.f32.mxu1 %v1210_v6 }
 0x115   :  { %452 = vmatmul.mubr.f32.gmra.mrb[24].mxu1 %v267_v25 }
 0x116   :  { %457 = vmatprep.mubr.f32.mxu1 %v1210_v6 }
 0x119   :  { %458 = vmatmul.mubr.f32.gmra.mrb[26].mxu1 %v268_v28 }
 0x11a   :  { %463 = vmatprep.mubr.f32.mxu1 %v1210_v6 }
 0x11d   :  { %464 = vmatmul.mubr.f32.gmra.mrb[28].mxu1 %v269_v29 }
 0x11e   :  { %469 = vmatprep.mubr.f32.mxu1 %v1210_v6 }
 0x121   :  { %470 = vmatmul.mubr.f32.gmra.mrb[30].mxu1 %v270_v31 }
 0x122   :  { %1071 = vmatprep.mubr.msk.f32.mxu1 %vm1212_vm1, %v1210_v6 }
 0x1b8   :  { %v381_v48 = vpop.f32.mrb[0].mxu1 }
 0x1b9   :  { %v382_v49 = vadd.f32 %v381_v48, %v1572_v46  ;;  %v383_v50 = vpop.f32.mrb[1].mxu1 }
 0x1ba   :  { %v384_v51 = vadd.f32 %v383_v50, %v1574_v47 }
 0x1bb   :  { %v476_v54 = vmax.f32 %v382_v49, 0.0 }
 0x1bc   :  { %v477_v52 = vmax.f32 %v384_v51, 0.0  ;;  %v387_v53 = vpop.f32.mrb[2].mxu1 }
 0x1bd   :  { %v388_v55 = vadd.f32 %v387_v53, %v1572_v46  ;;  %v389_v56 = vpop.f32.mrb[3].mxu1 }
 0x1be   :  { %v390_v57 = vadd.f32 %v389_v56, %v1574_v47  ;;  %611 = vmatprep.mubr.f32.mxu0 %v477_v52 }
 0x1bf   :  { %612 = vmatmul.mubr.f32.vlgmr.msra.gmra.mrb[16].mxu0 %v476_v54  ;;  %v478_v60 = vmax.f32 %v388_v55, 0.0 }
 0x1c0   :  { %v479_v58 = vmax.f32 %v390_v57, 0.0  ;;  %v393_v59 = vpop.f32.mrb[4].mxu1 }
 0x1c1   :  { %v394_v61 = vadd.f32 %v393_v59, %v1572_v46  ;;  %v395_v62 = vpop.f32.mrb[5].mxu1 }
 0x1c2   :  { %v396_v63 = vadd.f32 %v395_v62, %v1574_v47  ;;  %616 = vmatprep.mubr.f32.mxu0 %v479_v58 }
 0x1c3   :  { %617 = vmatmul.mubr.f32.gmra.mrb[18].mxu0 %v478_v60  ;;  %v480_v2 = vmax.f32 %v394_v61, 0.0 }
 0x1c4   :  { %v481_v0 = vmax.f32 %v396_v63, 0.0  ;;  %v399_v1 = vpop.f32.mrb[6].mxu1 }
 0x1c5   :  { %v400_v3 = vadd.f32 %v399_v1, %v1572_v46  ;;  %v401_v4 = vpop.f32.mrb[7].mxu1 }
 0x1c6   :  { %v402_v5 = vadd.f32 %v401_v4, %v1574_v47  ;;  %621 = vmatprep.mubr.f32.mxu0 %v481_v0 }
 0x1c7   :  { %622 = vmatmul.mubr.f32.gmra.mrb[20].mxu0 %v480_v2  ;;  %v482_v9 = vmax.f32 %v400_v3, 0.0 }
 0x1c8   :  { %v483_v7 = vmax.f32 %v402_v5, 0.0  ;;  %v405_v8 = vpop.f32.mrb[8].mxu1 }
 0x1c9   :  { %v406_v10 = vadd.f32 %v405_v8, %v1572_v46  ;;  %v407_v11 = vpop.f32.mrb[9].mxu1 }
 0x1ca   :  { %v408_v12 = vadd.f32 %v407_v11, %v1574_v47  ;;  %626 = vmatprep.mubr.f32.mxu0 %v483_v7 }
 0x1cb   :  { %627 = vmatmul.mubr.f32.gmra.mrb[22].mxu0 %v482_v9  ;;  %v484_v15 = vmax.f32 %v406_v10, 0.0 }
 0x1cc   :  { %v485_v13 = vmax.f32 %v408_v12, 0.0  ;;  %v411_v14 = vpop.f32.mrb[10].mxu1 }
 0x1cd   :  { %v412_v16 = vadd.f32 %v411_v14, %v1572_v46  ;;  %v413_v17 = vpop.f32.mrb[11].mxu1 }
 0x1ce   :  { %v414_v18 = vadd.f32 %v413_v17, %v1574_v47  ;;  %631 = vmatprep.mubr.f32.mxu0 %v485_v13 }
 0x1cf   :  { %632 = vmatmul.mubr.f32.gmra.mrb[24].mxu0 %v484_v15  ;;  %v486_v21 = vmax.f32 %v412_v16, 0.0 }
 0x1d0   :  { %v487_v19 = vmax.f32 %v414_v18, 0.0  ;;  %v417_v20 = vpop.f32.mrb[12].mxu1 }
 0x1d1   :  { %v418_v22 = vadd.f32 %v417_v20, %v1572_v46  ;;  %v419_v23 = vpop.f32.mrb[13].mxu1  ;;  %v1211_v20 = vmov 0.0|0.0  }
 0x1d2   :  { %v420_v24 = vadd.f32 %v419_v23, %v1574_v47  ;;  %636 = vmatprep.mubr.f32.mxu0 %v487_v19  ;;  %1146 = vmatprep.subr.bf16.mxu1 %v1211_v20 }
 0x1d3   :  { %637 = vmatmul.mubr.f32.gmra.mrb[26].mxu0 %v486_v21  ;;  %v488_v27 = vmax.f32 %v418_v22, 0.0 }
 0x1d4   :  { %v489_v25 = vmax.f32 %v420_v24, 0.0  ;;  %v423_v26 = vpop.f32.mrb[14].mxu1 }
 0x1d5   :  { %v424_v28 = vadd.f32 %v423_v26, %v1572_v46  ;;  %v425_v29 = vpop.f32.mrb[15].mxu1 }
 0x1d6   :  { %v426_v30 = vadd.f32 %v425_v29, %v1574_v47  ;;  %641 = vmatprep.mubr.f32.mxu0 %v489_v25 }
 0x1d7   :  { %642 = vmatmul.mubr.f32.gmra.mrb[28].mxu0 %v488_v27  ;;  %v490_v33 = vmax.f32 %v424_v28, 0.0 }
 0x1d8   :  { %v491_v31 = vmax.f32 %v426_v30, 0.0  ;;  %v429_v32 = vpop.f32.mrb[16].mxu1 }
 0x1d9   :  { %v430_v34 = vadd.f32 %v429_v32, %v1572_v46  ;;  %v431_v35 = vpop.f32.mrb[17].mxu1 }
 0x1da   :  { %v432_v36 = vadd.f32 %v431_v35, %v1574_v47  ;;  %646 = vmatprep.mubr.f32.mxu0 %v491_v31 }
 0x1db   :  { %647 = vmatmul.mubr.f32.gmra.mrb[30].mxu0 %v490_v33  ;;  %v492_v39 = vmax.f32 %v430_v34, 0.0 }
 0x1dc   :  { %v493_v37 = vmax.f32 %v432_v36, 0.0  ;;  %v435_v38 = vpop.f32.mrb[18].mxu1 }
 0x1dd   :  { %v436_v40 = vadd.f32 %v435_v38, %v1572_v46  ;;  %v437_v41 = vpop.f32.mrb[19].mxu1 }
 0x1de   :  { %v438_v42 = vadd.f32 %v437_v41, %v1574_v47  ;;  %651 = vmatprep.mubr.f32.mxu0 %v493_v37 }
 0x1df   :  { %652 = vmatmul.mubr.f32.gmra.mrb[32].mxu0 %v492_v39  ;;  %v494_v45 = vmax.f32 %v436_v40, 0.0 }
 0x1e0   :  { %v495_v43 = vmax.f32 %v438_v42, 0.0  ;;  %v441_v44 = vpop.f32.mrb[20].mxu1 }
 0x1e1   :  { %v442_v48 = vadd.f32 %v441_v44, %v1572_v46  ;;  %v443_v49 = vpop.f32.mrb[21].mxu1 }
 0x1e2   :  { %v444_v50 = vadd.f32 %v443_v49, %v1574_v47  ;;  %656 = vmatprep.mubr.f32.mxu0 %v495_v43 }
 0x1e3   :  { %657 = vmatmul.mubr.f32.gmra.mrb[34].mxu0 %v494_v45  ;;  %v496_v53 = vmax.f32 %v442_v48, 0.0 }
 0x1e4   :  { %v497_v51 = vmax.f32 %v444_v50, 0.0  ;;  %v447_v52 = vpop.f32.mrb[22].mxu1 }
 0x1e5   :  { %v448_v54 = vadd.f32 %v447_v52, %v1572_v46  ;;  %v449_v55 = vpop.f32.mrb[23].mxu1 }
 0x1e6   :  { %v450_v56 = vadd.f32 %v449_v55, %v1574_v47  ;;  %661 = vmatprep.mubr.f32.mxu0 %v497_v51 }
 0x1e7   :  { %662 = vmatmul.mubr.f32.gmra.mrb[36].mxu0 %v496_v53  ;;  %v498_v59 = vmax.f32 %v448_v54, 0.0 }
 0x1e8   :  { %v499_v57 = vmax.f32 %v450_v56, 0.0  ;;  %v453_v58 = vpop.f32.mrb[24].mxu1 }
 0x1e9   :  { %v454_v60 = vadd.f32 %v453_v58, %v1572_v46  ;;  %v455_v61 = vpop.f32.mrb[25].mxu1 }
 0x1ea   :  { %v456_v62 = vadd.f32 %v455_v61, %v1574_v47  ;;  %666 = vmatprep.mubr.f32.mxu0 %v499_v57 }
 0x1eb   :  { %667 = vmatmul.mubr.f32.gmra.mrb[38].mxu0 %v498_v59  ;;  %v500_v1 = vmax.f32 %v454_v60, 0.0 }
 0x1ec   :  { %v501_v63 = vmax.f32 %v456_v62, 0.0  ;;  %v459_v0 = vpop.f32.mrb[26].mxu1 }
 0x1ed   :  { %v460_v2 = vadd.f32 %v459_v0, %v1572_v46  ;;  %v461_v3 = vpop.f32.mrb[27].mxu1 }
 0x1ee   :  { %v462_v4 = vadd.f32 %v461_v3, %v1574_v47  ;;  %671 = vmatprep.mubr.f32.mxu0 %v501_v63 }
 0x1ef   :  { %672 = vmatmul.mubr.f32.gmra.mrb[40].mxu0 %v500_v1  ;;  %v502_v8 = vmax.f32 %v460_v2, 0.0 }
 0x1f0   :  { %v503_v5 = vmax.f32 %v462_v4, 0.0  ;;  %v465_v7 = vpop.f32.mrb[28].mxu1 }
 0x1f1   :  { %v466_v9 = vadd.f32 %v465_v7, %v1572_v46  ;;  %v467_v10 = vpop.f32.mrb[29].mxu1 }
 0x1f2   :  { %v468_v11 = vadd.f32 %v467_v10, %v1574_v47  ;;  %676 = vmatprep.mubr.f32.mxu0 %v503_v5 }
 0x1f3   :  { %677 = vmatmul.mubr.f32.gmra.mrb[42].mxu0 %v502_v8  ;;  %v504_v14 = vmax.f32 %v466_v9, 0.0 }
 0x1f4   :  { %v505_v12 = vmax.f32 %v468_v11, 0.0  ;;  %v471_v13 = vpop.f32.mrb[30].mxu1 }
 0x1f5   :  { %v472_v15 = vadd.f32 %v471_v13, %v1572_v46  ;;  %v473_v16 = vpop.f32.mrb[31].mxu1  ;;  %v1613_v46 = vld [vmem:[%s1685_s6] ss:$0 sm:$0xff] }
 0x1f6   :  { %v474_v17 = vadd.f32 %v473_v16, %v1574_v47  ;;  %681 = vmatprep.mubr.f32.mxu0 %v505_v12 }
 0x1f7   :  { %682 = vmatmul.mubr.f32.gmra.mrb[44].mxu0 %v504_v14  ;;  %v506_v19 = vmax.f32 %v472_v15, 0.0 }
 0x1f8   :  { %v507_v18 = vmax.f32 %v474_v17, 0.0 }
 0x1fa   :  { %686 = vmatprep.mubr.f32.mxu0 %v507_v18 }
 0x1fb   :  { %687 = vmatmul.mubr.f32.gmra.mrb[46].mxu0 %v506_v19 }
 0x292   :  { %v942_v21 = vpop.f32.mrb[16].mxu0 }
 0x293   :  { %v943_v22 = vpop.f32.mrb[17].mxu0 }
 0x294   :  { %v944_v23 = vadd.f32 %v943_v22, %v942_v21 }
 0x296   :  { %v945_v47 = vpop.f32.mrb[18].mxu0  ;;  %v614_v25 = vadd.f32 %v944_v23, %v1613_v46 }
 0x297   :  { %v946_v24 = vpop.f32.mrb[19].mxu0 }
 0x298   :  { %v947_v26 = vadd.f32 %v946_v24, %v945_v47  ;;  %v692_v30 = vmax.f32 %v614_v25, 0.0 }
 0x29a   :  { %v619_v27 = vadd.f32 %v947_v26, %v1613_v46  ;;  %v948_v28 = vpop.f32.mrb[20].mxu0 }
 0x29b   :  { %v949_v29 = vpop.f32.mrb[21].mxu0 }
 0x29c   :  { %v693_v6 = vmax.f32 %v619_v27, 0.0  ;;  %v950_v31 = vadd.f32 %v949_v29, %v948_v28 }
 0x29e   :  { %v1147_v33 = vpack.c.bf16 %v693_v6, %v692_v30  ;;  %v951_v34 = vpop.f32.mrb[22].mxu0  ;;  %v624_v36 = vadd.f32 %v950_v31, %v1613_v46 }
 0x29f   :  { %v952_v35 = vpop.f32.mrb[23].mxu0 }
 0x2a0   :  { %v953_v37 = vadd.f32 %v952_v35, %v951_v34  ;;  %1149 = vmatpush3.bf16.xpose.msk.msra.mxu1 %vm1619_vm3, %v1147_v33  ;;  %v694_v41 = vmax.f32 %v624_v36, 0.0 }
 0x2a1   :  { %1150 = vmatprep.subr.bf16.mxu1 %v1211_v20 }
 0x2a2   :  { %v629_v38 = vadd.f32 %v953_v37, %v1613_v46  ;;  %v954_v39 = vpop.f32.mrb[24].mxu0 }
 0x2a3   :  { %v955_v40 = vpop.f32.mrb[25].mxu0 }
 0x2a4   :  { %v695_v42 = vmax.f32 %v629_v38, 0.0  ;;  %v956_v43 = vadd.f32 %v955_v40, %v954_v39 }
 0x2a6   :  { %v1151_v44 = vpack.c.bf16 %v695_v42, %v694_v41  ;;  %v957_v45 = vpop.f32.mrb[26].mxu0  ;;  %v634_v49 = vadd.f32 %v956_v43, %v1613_v46 }
 0x2a7   :  { %v958_v48 = vpop.f32.mrb[27].mxu0 }
 0x2a8   :  { %v959_v50 = vadd.f32 %v958_v48, %v957_v45  ;;  %1153 = vmatpush3.bf16.xpose.msk.msra.mxu1 %vm1619_vm3, %v1151_v44  ;;  %v696_v54 = vmax.f32 %v634_v49, 0.0  ;;  %v708_v49 = vld [vmem:[%s1686_s7] sm:$0x1]  ;;  %s1186_s7 = scalar_lea.vmem %s847_s1, 16 }
 0x2a9   :  { %1154 = vmatprep.subr.bf16.mxu1 %v1211_v20  ;;  %p1187_p0 = scmp.ne.s32.totalorder %s847_s1, %s1186_s7  ;;  %p1192_p2 = scmp.lt.s32.totalorder %s1190_s0, %s1186_s7 }
 0x2aa   :  { %v639_v51 = vadd.f32 %v959_v50, %v1613_v46  ;;  %v960_v52 = vpop.f32.mrb[28].mxu0  ;;  %v710_v50 = vstv %s1687_s8 }
 0x2ab   :  { %v961_v53 = vpop.f32.mrb[29].mxu0  ;;  %p1193_p3 = por %p1192_p2, %p1191_p1 }
 0x2ac   :  { %v697_v55 = vmax.f32 %v639_v51, 0.0  ;;  %v962_v56 = vadd.f32 %v961_v53, %v960_v52 }
 0x2ad   :  { %p1194_p4 = pnand %p1193_p3, %p1187_p0 }
 0x2ae   :  { %v1155_v57 = vpack.c.bf16 %v697_v55, %v696_v54  ;;  %v963_v58 = vpop.f32.mrb[30].mxu0  ;;  %v644_v60 = vadd.f32 %v962_v56, %v1613_v46 }
 0x2af   :  { %v964_v59 = vpop.f32.mrb[31].mxu0 }
 0x2b0   :  { %v965_v61 = vadd.f32 %v964_v59, %v963_v58  ;;  %1157 = vmatpush3.bf16.xpose.msk.msra.mxu1 %vm1619_vm3, %v1155_v57  ;;  %v698_v1 = vmax.f32 %v644_v60, 0.0 }
 0x2b1   :  { %1158 = vmatprep.subr.bf16.mxu1 %v1211_v20 }
 0x2b2   :  { %v649_v62 = vadd.f32 %v965_v61, %v1613_v46  ;;  %v966_v63 = vpop.f32.mrb[32].mxu0 }
 0x2b3   :  { %v967_v0 = vpop.f32.mrb[33].mxu0 }
 0x2b4   :  { %v699_v2 = vmax.f32 %v649_v62, 0.0  ;;  %v968_v3 = vadd.f32 %v967_v0, %v966_v63 }
 0x2b6   :  { %v1159_v4 = vpack.c.bf16 %v699_v2, %v698_v1  ;;  %v969_v5 = vpop.f32.mrb[34].mxu0  ;;  %v654_v8 = vadd.f32 %v968_v3, %v1613_v46 }
 0x2b7   :  { %v970_v7 = vpop.f32.mrb[35].mxu0 }
 0x2b8   :  { %v971_v9 = vadd.f32 %v970_v7, %v969_v5  ;;  %1161 = vmatpush3.bf16.xpose.msk.msra.mxu1 %vm1619_vm3, %v1159_v4  ;;  %v700_v13 = vmax.f32 %v654_v8, 0.0 }
 0x2b9   :  { %1162 = vmatprep.subr.bf16.mxu1 %v1211_v20 }
 0x2ba   :  { %v659_v10 = vadd.f32 %v971_v9, %v1613_v46  ;;  %v972_v11 = vpop.f32.mrb[36].mxu0 }
 0x2bb   :  { %v973_v12 = vpop.f32.mrb[37].mxu0 }
 0x2bc   :  { %v701_v14 = vmax.f32 %v659_v10, 0.0  ;;  %v974_v15 = vadd.f32 %v973_v12, %v972_v11 }
 0x2be   :  { %v1163_v16 = vpack.c.bf16 %v701_v14, %v700_v13  ;;  %v975_v17 = vpop.f32.mrb[38].mxu0  ;;  %v664_v19 = vadd.f32 %v974_v15, %v1613_v46 }
 0x2bf   :  { %v976_v18 = vpop.f32.mrb[39].mxu0 }
 0x2c0   :  { %v977_v21 = vadd.f32 %v976_v18, %v975_v17  ;;  %1165 = vmatpush3.bf16.xpose.msk.msra.mxu1 %vm1619_vm3, %v1163_v16  ;;  %v702_v24 = vmax.f32 %v664_v19, 0.0 }
 0x2c1   :  { %1166 = vmatprep.subr.bf16.mxu1 %v1211_v20 }
 0x2c2   :  { %v669_v22 = vadd.f32 %v977_v21, %v1613_v46  ;;  %v978_v23 = vpop.f32.mrb[40].mxu0 }
 0x2c3   :  { %v979_v47 = vpop.f32.mrb[41].mxu0 }
 0x2c4   :  { %v703_v25 = vmax.f32 %v669_v22, 0.0  ;;  %v980_v26 = vadd.f32 %v979_v47, %v978_v23 }
 0x2c6   :  { %v1167_v27 = vpack.c.bf16 %v703_v25, %v702_v24  ;;  %v981_v28 = vpop.f32.mrb[42].mxu0  ;;  %v674_v30 = vadd.f32 %v980_v26, %v1613_v46 }
 0x2c7   :  { %v982_v29 = vpop.f32.mrb[43].mxu0 }
 0x2c8   :  { %v983_v6 = vadd.f32 %v982_v29, %v981_v28  ;;  %1169 = vmatpush3.bf16.xpose.msk.msra.mxu1 %vm1619_vm3, %v1167_v27  ;;  %v704_v35 = vmax.f32 %v674_v30, 0.0 }
 0x2c9   :  { %1170 = vmatprep.subr.bf16.mxu1 %v1211_v20 }
 0x2ca   :  { %v679_v31 = vadd.f32 %v983_v6, %v1613_v46  ;;  %v984_v33 = vpop.f32.mrb[44].mxu0 }
 0x2cb   :  { %v985_v34 = vpop.f32.mrb[45].mxu0 }
 0x2cc   :  { %v705_v36 = vmax.f32 %v679_v31, 0.0  ;;  %v986_v37 = vadd.f32 %v985_v34, %v984_v33 }
 0x2ce   :  { %v1171_v38 = vpack.c.bf16 %v705_v36, %v704_v35  ;;  %v987_v39 = vpop.f32.mrb[46].mxu0  ;;  %v684_v41 = vadd.f32 %v986_v37, %v1613_v46 }
 0x2cf   :  { %v988_v40 = vpop.f32.mrb[47].mxu0 }
 0x2d0   :  { %v989_v42 = vadd.f32 %v988_v40, %v987_v39  ;;  %1173 = vmatpush3.bf16.xpose.msk.msra.mxu1 %vm1619_vm3, %v1171_v38  ;;  %v706_v44 = vmax.f32 %v684_v41, 0.0 }
 0x2d1   :  { %1174 = vmatprep.subr.bf16.mxu1 %v1211_v20 }
 0x2d2   :  { %v689_v43 = vadd.f32 %v989_v42, %v1613_v46 }
 0x2d4   :  { %v707_v45 = vmax.f32 %v689_v43, 0.0 }
 0x2d6   :  { %v1175_v48 = vpack.c.bf16 %v707_v45, %v706_v44 }
 0x2d8   :  { %1177 = vmatpush3.bf16.xpose.msk.msra.mxu1 %vm1619_vm3, %v1175_v48 }
 0x2df   :  { %1072 = vmatmul.mubr.msk.f32.vlgmr.msra.gmra.mrb[32].mxu1 %vm711_vm2, %v708_v49 }
 0x3b2   :  { %v829_v51 = vpop.f32.mrb[32].mxu1 }
 0x3b3   :  { %v830_v20 = vadd.f32 %v829_v51, %v710_v50  ;;  %v1073_v52 = vpop.f32.mrb[33].mxu1 }
 0x3b5   :  { %v889_v46 = vmul.f32 -1.442695, %v830_v20 }
 0x3b7   :  { %1182 = vpow2.f32 %v889_v46 }
 0x3c1   :  { %v1183_v53 = vpop.eup %1182 }
 0x3c2   :  { %v836_v54 = vadd.f32 1.0, %v1183_v53 }
 0x3c4   :  { %1184 = vrcp.f32 %v836_v54 }
 0x3ce   :  { %v1185_v32 = vpop.eup %1184 }
 0x3cf   :  { %839 = vst [vmem:[#allocation3] sm:$0x1] %v1185_v32 }
 0x3d0   :  { %1197 = shalt.err (!%p1194_p4)
}
 0x3d1   :  { %s1198_s25 = scalar_lea.hbm %s1688_s9, 16 }
 0x3d2   :  { %p1199_p5 = scmp.ne.s32.totalorder %s1688_s9, %s1198_s25  ;;  %p1202_p6 = scmp.lt.u32.totalorder %s1198_s25, %s1688_s9 }
 0x3d4   :  { %p1204_p7 = pnand %p1202_p6, %p1199_p5 }
 0x3d6   :  { %1207 = shalt.err (!%p1204_p7)
}
 0x3d7   :  { %849 = dma.vmem_to_hbm [thread:$0]  %s847_s1, 16, %s1688_s9, [#allocation4]  }
 0x3d8   :  { %1208 = dma.done.wait [#allocation4], 16  }
 0x3d9   :  { %1209 = vsyncadd [#allocation4], 4294967280 }
 0x3da   :  { %853 = vsyncpa [#allocation4], 1 }

</bundles_post_ra>
